<compile_context>
chip_gen: v5e
topology: v5e:2x2
jax: 0.10.0
libtpu: 0.0.40
codegen_flags: <defaults>
</compile_context>

<pallas_src>
import functools

import jax
import jax.numpy as jnp
from jax import lax
from jax.experimental import pallas as pl
from jax.experimental.pallas import tpu as pltpu


# ----------------------------- Pallas kernel --------------------------------
def _dice_rce_kernel(x_ref, t_ref, ce_ref, inter_ref, pred_ref, gt_ref):
    # x_ref:  (C, S_TILE) logits (channels on sublanes, spatial on lanes)
    # t_ref:  (1, S_TILE) i32 labels (-1 marks padded voxels)
    # outputs: (C, 1) f32 accumulators, VMEM-resident across the spatial axis
    @pl.when(pl.program_id(1) == 0)
    def _init():
        ce_ref[...] = jnp.zeros_like(ce_ref)
        inter_ref[...] = jnp.zeros_like(inter_ref)
        pred_ref[...] = jnp.zeros_like(pred_ref)
        gt_ref[...] = jnp.zeros_like(gt_ref)

    x = x_ref[...].astype(jnp.float32)               # (C, S)
    t = t_ref[...]                                   # (1, S)

    # numerically stable softmax / log-sum-exp over channels (sublanes)
    m = jnp.max(x, axis=0, keepdims=True)            # (1, S)
    ex = jnp.exp(x - m)                              # (C, S)  EUP
    denom = jnp.sum(ex, axis=0, keepdims=True)       # (1, S)
    inv = pl.reciprocal(denom, approx=False)         # EUP, off the VALU slot
    lse = jnp.log(denom) + m                         # (1, S)
    sm = ex * inv                                    # (C, S) softmax probs

    # one-hot(target) as a boolean mask (no f32 one-hot materialized)
    cls = lax.broadcasted_iota(jnp.int32, x.shape, 0)    # (C, S)
    valid = t >= 0                                       # (1, S) pad mask
    is_t = (cls == t) & valid                            # (C, S) bool

    zero = jnp.zeros_like(sm)
    # per-class partial sums over the spatial tile (lane reductions).
    # select-masking (not multiply) so padded columns can never leak NaN/Inf.
    inter_ref[...] += jnp.sum(jnp.where(is_t, sm, zero), axis=1, keepdims=True)
    pred_ref[...] += jnp.sum(jnp.where(valid, sm, zero), axis=1, keepdims=True)
    gt_ref[...] += jnp.sum(is_t.astype(jnp.float32), axis=1, keepdims=True)
    # cross entropy folded per class: sum_s onehot[c,s] * (lse[s] - x[c,s])
    ce_ref[...] += jnp.sum(jnp.where(is_t, lse - x, zero), axis=1, keepdims=True)


def _run_kernel(x_bcs, t_b1s, s_tile):
    B, C, S = x_bcs.shape
    n_s = S // s_tile
    out_shape = tuple(jax.ShapeDtypeStruct((B, C, 1), jnp.float32)
                      for _ in range(4))
    grid_spec = pltpu.PrefetchScalarGridSpec(
        num_scalar_prefetch=0,
        grid=(B, n_s),
        in_specs=[
            pl.BlockSpec((None, C, s_tile), lambda b, s: (b, 0, s)),
            pl.BlockSpec((None, 1, s_tile), lambda b, s: (b, 0, s)),
        ],
        out_specs=[pl.BlockSpec((None, C, 1), lambda b, s: (b, 0, 0))
                   for _ in range(4)],
    )
    return pl.pallas_call(
        _dice_rce_kernel,
        out_shape=out_shape,
        grid_spec=grid_spec,
        compiler_params=pltpu.CompilerParams(
            dimension_semantics=("parallel", "arbitrary")),
    )(x_bcs, t_b1s)


# ------------------------------- Wrapper -------------------------------------
def _round_up(x, m):
    return (x + m - 1) // m * m


def _pick_tile(S, C, s_tile, itemsize):
    if s_tile is None:
        # target ~1 MiB of logits per input block: big enough to amortize the
        # per-grid-step overhead, small enough (with double-buffering and
        # elementwise temporaries) to stay well inside the default VMEM limit
        # on v5e/v6e/v7x.
        target_bytes = 1 << 20
        s_tile = max(512, target_bytes // max(1, C * itemsize))
    s_row = _round_up(S, 128)
    return _round_up(min(s_tile, s_row), 128)


@functools.partial(jax.jit, static_argnames=("weight_ce", "weight_dice",
                                             "smooth", "alpha", "eps",
                                             "s_tile"))
def dice_rce_loss(net_output, target, *, weight_ce=1.0, weight_dice=1.0,
                  smooth=1e-5, alpha=0.1, eps=1e-10, s_tile=None):
    """net_output: (B, C, H, W) float logits; target: (B, 1, H, W) int labels.

    s_tile=None auto-picks a spatial tile (~1 MiB of logits per block).
    """
    B, C, H, W = net_output.shape
    S = H * W

    # NCHW -> (B, C, S) is a free trailing-dim reshape (no transpose pass,
    # no dtype copy: the kernel casts each block).
    x = net_output.reshape(B, C, S)
    t = target.reshape(B, 1, S).astype(jnp.int32)

    tile = _pick_tile(S, C, s_tile, jnp.dtype(x.dtype).itemsize)
    s_pad = _round_up(S, tile)
    if s_pad != S:
        # rare path (nnU-Net patch sizes are multiples of 128 voxels);
        # padded voxels carry label -1 and are masked in-kernel.
        x = jnp.pad(x, ((0, 0), (0, 0), (0, s_pad - S)))
        t = jnp.pad(t, ((0, 0), (0, 0), (0, s_pad - S)), constant_values=-1)

    ce_bc1, inter_bc1, pred_bc1, gt_bc1 = _run_kernel(x, t, tile)
    inter_bc = inter_bc1[:, :, 0]    # (B, C)
    pred_bc = pred_bc1[:, :, 0]      # (B, C)
    gt_bc = gt_bc1[:, :, 0]          # (B, C)

    # ---- RCELoss: mean CE + alpha * region-proportion L1 (all classes) ------
    ce_mean = jnp.sum(ce_bc1) / (B * S)
    gt_prop = (gt_bc + eps) / (S + eps)
    pred_prop = (pred_bc + eps) / (S + eps)
    loss_reg = jnp.mean(jnp.abs(pred_prop - gt_prop))
    ce_loss = ce_mean + alpha * loss_reg

    # ---- MemoryEfficientSoftDiceLoss (do_bg=False, batch_dice=True) ---------
    i = jnp.sum(inter_bc[:, 1:], axis=0)
    p = jnp.sum(pred_bc[:, 1:], axis=0)
    g = jnp.sum(gt_bc[:, 1:], axis=0)
    dc = (2.0 * i + smooth) / jnp.maximum(g + p + smooth, 1e-8)
    dc_loss = -jnp.mean(dc)

    return weight_ce * ce_loss + weight_dice * dc_loss


# ------------------------- Pure-JAX reference --------------------------------
def _reference(net_output, target, *, smooth=1e-5, alpha=0.1, eps=1e-10):
    B, C, H, W = net_output.shape
    probs = jax.nn.softmax(net_output.astype(jnp.float32), axis=1)
    t = target[:, 0].astype(jnp.int32)
    onehot = jax.nn.one_hot(t, C, axis=1, dtype=jnp.float32)   # (B, C, H, W)
    axes = (2, 3)
    intersect = jnp.sum(probs * onehot, axis=axes)
    sum_pred = jnp.sum(probs, axis=axes)
    sum_gt = jnp.sum(onehot, axis=axes)

    i, p, g = (a[:, 1:].sum(0) for a in (intersect, sum_pred, sum_gt))
    dc = (2 * i + smooth) / jnp.maximum(g + p + smooth, 1e-8)
    dc_loss = -jnp.mean(dc)

    logp = jax.nn.log_softmax(net_output.astype(jnp.float32), axis=1)
    ce = -jnp.take_along_axis(logp, t[:, None], axis=1)[:, 0]
    ce_mean = jnp.mean(ce)
    S = H * W
    gt_prop = (sum_gt + eps) / (S + eps)
    pred_prop = (sum_pred + eps) / (S + eps)
    loss_reg = jnp.mean(jnp.abs(pred_prop - gt_prop))
    ce_loss = ce_mean + alpha * loss_reg
    return ce_loss + dc_loss


# --------------------------------- Main ---------------------------------------
if __name__ == "__main__":
    key = jax.random.PRNGKey(0)
    k1, k2, k3, k4 = jax.random.split(key, 4)

    # Test 1: standard shape, small tile to exercise the multi-tile accumulator.
    B, C, H, W = 2, 4, 16, 16
    net_output = jax.random.normal(k1, (B, C, H, W), dtype=jnp.float32)
    target = jax.random.randint(k2, (B, 1, H, W), 0, C, dtype=jnp.int32)
    loss = jax.block_until_ready(dice_rce_loss(net_output, target, s_tile=128))
    ref = jax.block_until_ready(_reference(net_output, target))
    assert jnp.allclose(loss, ref, atol=1e-4, rtol=1e-4), (loss, ref)

    # Test 2: ragged spatial size + auto tile to exercise pad masking.
    H2, W2 = 15, 17
    net_output2 = jax.random.normal(k3, (B, C, H2, W2), dtype=jnp.float32)
    target2 = jax.random.randint(k4, (B, 1, H2, W2), 0, C, dtype=jnp.int32)
    loss2 = jax.block_until_ready(dice_rce_loss(net_output2, target2))
    ref2 = jax.block_until_ready(_reference(net_output2, target2))
    assert jnp.allclose(loss2, ref2, atol=1e-4, rtol=1e-4), (loss2, ref2)

    print("KERNEL_OK")
</pallas_src>

<mosaic_0001>
module attributes {stable_mosaic.version = 11 : i64} {
  func.func @_dice_rce_kernel(%arg0: i32, %arg1: i32, %arg2: memref<1x4x128xf32, #tpu.memory_space<vmem>>, %arg3: memref<1x1x128xi32, #tpu.memory_space<vmem>>, %arg4: memref<1x4x1xf32, #tpu.memory_space<vmem>>, %arg5: memref<1x4x1xf32, #tpu.memory_space<vmem>>, %arg6: memref<1x4x1xf32, #tpu.memory_space<vmem>>, %arg7: memref<1x4x1xf32, #tpu.memory_space<vmem>>) attributes {dimension_semantics = [#tpu.dimension_semantics<parallel>, #tpu.dimension_semantics<arbitrary>], iteration_bounds = array<i64: 2, 2>, scalar_prefetch = 0 : i64, scratch_operands = 0 : i64, tpu.core_type = #tpu.core_type<tc>, window_params = [{transform_indices = @transform_0, window_bounds = array<i64: 1, 4, 128>}, {transform_indices = @transform_1, window_bounds = array<i64: 1, 1, 128>}, {transform_indices = @transform_2, window_bounds = array<i64: 1, 4, 1>}, {transform_indices = @transform_3, window_bounds = array<i64: 1, 4, 1>}, {transform_indices = @transform_4, window_bounds = array<i64: 1, 4, 1>}, {transform_indices = @transform_5, window_bounds = array<i64: 1, 4, 1>}]} {
    %c0_i32 = arith.constant 0 : i32
    %0 = arith.cmpi eq, %arg1, %c0_i32 : i32
    %1 = arith.extui %0 : i1 to i32
    %c0_i32_0 = arith.constant 0 : i32
    %2 = arith.cmpi ne, %1, %c0_i32_0 : i32
    scf.if %2 {
      %cst_37 = arith.constant 0.000000e+00 : f32
      %68 = vector.broadcast %cst_37 : f32 to vector<4x1xf32>
      %c0_38 = arith.constant 0 : index
      %c0_39 = arith.constant 0 : index
      %c0_40 = arith.constant 0 : index
      %69 = vector.load %arg4[%c0_38, %c0_39, %c0_40] : memref<1x4x1xf32, #tpu.memory_space<vmem>>, vector<1x4x1xf32>
      %70 = vector.shape_cast %69 : vector<1x4x1xf32> to vector<4x1xf32>
      %71 = vector.shape_cast %68 : vector<4x1xf32> to vector<1x4x1xf32>
      tpu.vector_store %arg4[%c0_38, %c0_39, %c0_40], %71 {strides = array<i32>} : memref<1x4x1xf32, #tpu.memory_space<vmem>>, vector<1x4x1xf32>,
      %cst_41 = arith.constant 0.000000e+00 : f32
      %72 = vector.broadcast %cst_41 : f32 to vector<4x1xf32>
      %c0_42 = arith.constant 0 : index
      %c0_43 = arith.constant 0 : index
      %c0_44 = arith.constant 0 : index
      %73 = vector.load %arg5[%c0_42, %c0_43, %c0_44] : memref<1x4x1xf32, #tpu.memory_space<vmem>>, vector<1x4x1xf32>
      %74 = vector.shape_cast %73 : vector<1x4x1xf32> to vector<4x1xf32>
      %75 = vector.shape_cast %72 : vector<4x1xf32> to vector<1x4x1xf32>
      tpu.vector_store %arg5[%c0_42, %c0_43, %c0_44], %75 {strides = array<i32>} : memref<1x4x1xf32, #tpu.memory_space<vmem>>, vector<1x4x1xf32>,
      %cst_45 = arith.constant 0.000000e+00 : f32
      %76 = vector.broadcast %cst_45 : f32 to vector<4x1xf32>
      %c0_46 = arith.constant 0 : index
      %c0_47 = arith.constant 0 : index
      %c0_48 = arith.constant 0 : index
      %77 = vector.load %arg6[%c0_46, %c0_47, %c0_48] : memref<1x4x1xf32, #tpu.memory_space<vmem>>, vector<1x4x1xf32>
      %78 = vector.shape_cast %77 : vector<1x4x1xf32> to vector<4x1xf32>
      %79 = vector.shape_cast %76 : vector<4x1xf32> to vector<1x4x1xf32>
      tpu.vector_store %arg6[%c0_46, %c0_47, %c0_48], %79 {strides = array<i32>} : memref<1x4x1xf32, #tpu.memory_space<vmem>>, vector<1x4x1xf32>,
      %cst_49 = arith.constant 0.000000e+00 : f32
      %80 = vector.broadcast %cst_49 : f32 to vector<4x1xf32>
      %c0_50 = arith.constant 0 : index
      %c0_51 = arith.constant 0 : index
      %c0_52 = arith.constant 0 : index
      %81 = vector.load %arg7[%c0_50, %c0_51, %c0_52] : memref<1x4x1xf32, #tpu.memory_space<vmem>>, vector<1x4x1xf32>
      %82 = vector.shape_cast %81 : vector<1x4x1xf32> to vector<4x1xf32>
      %83 = vector.shape_cast %80 : vector<4x1xf32> to vector<1x4x1xf32>
      tpu.vector_store %arg7[%c0_50, %c0_51, %c0_52], %83 {strides = array<i32>} : memref<1x4x1xf32, #tpu.memory_space<vmem>>, vector<1x4x1xf32>,
    } else {
    }
    %c0 = arith.constant 0 : index
    %c0_1 = arith.constant 0 : index
    %c0_2 = arith.constant 0 : index
    %3 = vector.load %arg2[%c0, %c0_1, %c0_2] : memref<1x4x128xf32, #tpu.memory_space<vmem>>, vector<1x4x128xf32>
    %4 = vector.shape_cast %3 : vector<1x4x128xf32> to vector<4x128xf32>
    %c0_3 = arith.constant 0 : index
    %c0_4 = arith.constant 0 : index
    %c0_5 = arith.constant 0 : index
    %5 = vector.load %arg3[%c0_3, %c0_4, %c0_5] : memref<1x1x128xi32, #tpu.memory_space<vmem>>, vector<1x1x128xi32>
    %6 = vector.shape_cast %5 : vector<1x1x128xi32> to vector<1x128xi32>
    %cst = arith.constant dense<0xFF800000> : vector<128xf32>
    %7 = vector.multi_reduction <maximumf>, %4, %cst [0] : vector<4x128xf32> to vector<128xf32>
    %8 = vector.shape_cast %7 : vector<128xf32> to vector<1x128xf32>
    %9 = vector.broadcast %8 : vector<1x128xf32> to vector<4x128xf32>
    %10 = arith.subf %4, %9 : vector<4x128xf32>
    %11 = math.exp %10 : vector<4x128xf32>
    %cst_6 = arith.constant dense<0.000000e+00> : vector<128xf32>
    %12 = vector.multi_reduction <add>, %11, %cst_6 [0] : vector<4x128xf32> to vector<128xf32>
    %13 = vector.shape_cast %12 : vector<128xf32> to vector<1x128xf32>
    %14 = tpu.reciprocal %13 : vector<1x128xf32> -> vector<1x128xf32>
    %15 = math.log %13 : vector<1x128xf32>
    %16 = arith.addf %15, %8 : vector<1x128xf32>
    %17 = vector.broadcast %14 : vector<1x128xf32> to vector<4x128xf32>
    %18 = arith.mulf %11, %17 : vector<4x128xf32>
    %19 = tpu.iota {dimensions = array<i32: 0>} : vector<4x128xi32>
    %c0_i32_7 = arith.constant 0 : i32
    %20 = vector.broadcast %c0_i32_7 : i32 to vector<1x128xi32>
    %21 = arith.cmpi sge, %6, %20 : vector<1x128xi32>
    %22 = vector.broadcast %6 : vector<1x128xi32> to vector<4x128xi32>
    %23 = arith.cmpi eq, %19, %22 : vector<4x128xi32>
    %24 = vector.broadcast %21 : vector<1x128xi1> to vector<4x128xi1>
    %25 = arith.andi %23, %24 : vector<4x128xi1>
    %cst_8 = arith.constant 0.000000e+00 : f32
    %26 = vector.broadcast %cst_8 : f32 to vector<4x128xf32>
    %c0_9 = arith.constant 0 : index
    %c0_10 = arith.constant 0 : index
    %c0_11 = arith.constant 0 : index
    %27 = vector.load %arg5[%c0_9, %c0_10, %c0_11] : memref<1x4x1xf32, #tpu.memory_space<vmem>>, vector<1x4x1xf32>
    %28 = vector.shape_cast %27 : vector<1x4x1xf32> to vector<4x1xf32>
    %29 = arith.select %25, %18, %26 : vector<4x128xi1>, vector<4x128xf32>
    %cst_12 = arith.constant dense<0.000000e+00> : vector<4xf32>
    %30 = vector.multi_reduction <add>, %29, %cst_12 [1] : vector<4x128xf32> to vector<4xf32>
    %31 = vector.shape_cast %30 : vector<4xf32> to vector<4x1xf32>
    %32 = arith.addf %28, %31 : vector<4x1xf32>
    %c0_13 = arith.constant 0 : index
    %c0_14 = arith.constant 0 : index
    %c0_15 = arith.constant 0 : index
    %33 = vector.load %arg5[%c0_13, %c0_14, %c0_15] : memref<1x4x1xf32, #tpu.memory_space<vmem>>, vector<1x4x1xf32>
    %34 = vector.shape_cast %33 : vector<1x4x1xf32> to vector<4x1xf32>
    %35 = vector.shape_cast %32 : vector<4x1xf32> to vector<1x4x1xf32>
    tpu.vector_store %arg5[%c0_13, %c0_14, %c0_15], %35 {strides = array<i32>} : memref<1x4x1xf32, #tpu.memory_space<vmem>>, vector<1x4x1xf32>,
    %c0_16 = arith.constant 0 : index
    %c0_17 = arith.constant 0 : index
    %c0_18 = arith.constant 0 : index
    %36 = vector.load %arg6[%c0_16, %c0_17, %c0_18] : memref<1x4x1xf32, #tpu.memory_space<vmem>>, vector<1x4x1xf32>
    %37 = vector.shape_cast %36 : vector<1x4x1xf32> to vector<4x1xf32>
    %38 = vector.shape_cast %21 : vector<1x128xi1> to vector<1x128xi1>
    %39 = vector.broadcast %38 : vector<1x128xi1> to vector<4x128xi1>
    %40 = arith.select %39, %18, %26 : vector<4x128xi1>, vector<4x128xf32>
    %cst_19 = arith.constant dense<0.000000e+00> : vector<4xf32>
    %41 = vector.multi_reduction <add>, %40, %cst_19 [1] : vector<4x128xf32> to vector<4xf32>
    %42 = vector.shape_cast %41 : vector<4xf32> to vector<4x1xf32>
    %43 = arith.addf %37, %42 : vector<4x1xf32>
    %c0_20 = arith.constant 0 : index
    %c0_21 = arith.constant 0 : index
    %c0_22 = arith.constant 0 : index
    %44 = vector.load %arg6[%c0_20, %c0_21, %c0_22] : memref<1x4x1xf32, #tpu.memory_space<vmem>>, vector<1x4x1xf32>
    %45 = vector.shape_cast %44 : vector<1x4x1xf32> to vector<4x1xf32>
    %46 = vector.shape_cast %43 : vector<4x1xf32> to vector<1x4x1xf32>
    tpu.vector_store %arg6[%c0_20, %c0_21, %c0_22], %46 {strides = array<i32>} : memref<1x4x1xf32, #tpu.memory_space<vmem>>, vector<1x4x1xf32>,
    %c0_23 = arith.constant 0 : index
    %c0_24 = arith.constant 0 : index
    %c0_25 = arith.constant 0 : index
    %47 = vector.load %arg7[%c0_23, %c0_24, %c0_25] : memref<1x4x1xf32, #tpu.memory_space<vmem>>, vector<1x4x1xf32>
    %48 = vector.shape_cast %47 : vector<1x4x1xf32> to vector<4x1xf32>
    %49 = arith.extui %25 : vector<4x128xi1> to vector<4x128xi32>
    %50 = arith.sitofp %49 : vector<4x128xi32> to vector<4x128xf32>
    %cst_26 = arith.constant dense<0.000000e+00> : vector<4xf32>
    %51 = vector.multi_reduction <add>, %50, %cst_26 [1] : vector<4x128xf32> to vector<4xf32>
    %52 = vector.shape_cast %51 : vector<4xf32> to vector<4x1xf32>
    %53 = arith.addf %48, %52 : vector<4x1xf32>
    %c0_27 = arith.constant 0 : index
    %c0_28 = arith.constant 0 : index
    %c0_29 = arith.constant 0 : index
    %54 = vector.load %arg7[%c0_27, %c0_28, %c0_29] : memref<1x4x1xf32, #tpu.memory_space<vmem>>, vector<1x4x1xf32>
    %55 = vector.shape_cast %54 : vector<1x4x1xf32> to vector<4x1xf32>
    %56 = vector.shape_cast %53 : vector<4x1xf32> to vector<1x4x1xf32>
    tpu.vector_store %arg7[%c0_27, %c0_28, %c0_29], %56 {strides = array<i32>} : memref<1x4x1xf32, #tpu.memory_space<vmem>>, vector<1x4x1xf32>,
    %c0_30 = arith.constant 0 : index
    %c0_31 = arith.constant 0 : index
    %c0_32 = arith.constant 0 : index
    %57 = vector.load %arg4[%c0_30, %c0_31, %c0_32] : memref<1x4x1xf32, #tpu.memory_space<vmem>>, vector<1x4x1xf32>
    %58 = vector.shape_cast %57 : vector<1x4x1xf32> to vector<4x1xf32>
    %59 = vector.broadcast %16 : vector<1x128xf32> to vector<4x128xf32>
    %60 = arith.subf %59, %4 : vector<4x128xf32>
    %61 = arith.select %25, %60, %26 : vector<4x128xi1>, vector<4x128xf32>
    %cst_33 = arith.constant dense<0.000000e+00> : vector<4xf32>
    %62 = vector.multi_reduction <add>, %61, %cst_33 [1] : vector<4x128xf32> to vector<4xf32>
    %63 = vector.shape_cast %62 : vector<4xf32> to vector<4x1xf32>
    %64 = arith.addf %58, %63 : vector<4x1xf32>
    %c0_34 = arith.constant 0 : index
    %c0_35 = arith.constant 0 : index
    %c0_36 = arith.constant 0 : index
    %65 = vector.load %arg4[%c0_34, %c0_35, %c0_36] : memref<1x4x1xf32, #tpu.memory_space<vmem>>, vector<1x4x1xf32>
    %66 = vector.shape_cast %65 : vector<1x4x1xf32> to vector<4x1xf32>
    %67 = vector.shape_cast %64 : vector<4x1xf32> to vector<1x4x1xf32>
    tpu.vector_store %arg4[%c0_34, %c0_35, %c0_36], %67 {strides = array<i32>} : memref<1x4x1xf32, #tpu.memory_space<vmem>>, vector<1x4x1xf32>,
    return
  }
  func.func @transform_0(%arg0: i32, %arg1: i32) -> (i32, i32, i32) {
    %c0_i32 = arith.constant 0 : i32
    %c0_i32_0 = arith.constant 0 : i32
    return %arg0, %c0_i32, %arg1 : i32, i32, i32
  }
  func.func @transform_1(%arg0: i32, %arg1: i32) -> (i32, i32, i32) {
    %c0_i32 = arith.constant 0 : i32
    %c0_i32_0 = arith.constant 0 : i32
    return %arg0, %c0_i32, %arg1 : i32, i32, i32
  }
  func.func @transform_2(%arg0: i32, %arg1: i32) -> (i32, i32, i32) {
    %c0_i32 = arith.constant 0 : i32
    %c0_i32_0 = arith.constant 0 : i32
    %c0_i32_1 = arith.constant 0 : i32
    return %arg0, %c0_i32, %c0_i32_0 : i32, i32, i32
  }
  func.func @transform_3(%arg0: i32, %arg1: i32) -> (i32, i32, i32) {
    %c0_i32 = arith.constant 0 : i32
    %c0_i32_0 = arith.constant 0 : i32
    %c0_i32_1 = arith.constant 0 : i32
    return %arg0, %c0_i32, %c0_i32_0 : i32, i32, i32
  }
  func.func @transform_4(%arg0: i32, %arg1: i32) -> (i32, i32, i32) {
    %c0_i32 = arith.constant 0 : i32
    %c0_i32_0 = arith.constant 0 : i32
    %c0_i32_1 = arith.constant 0 : i32
    return %arg0, %c0_i32, %c0_i32_0 : i32, i32, i32
  }
  func.func @transform_5(%arg0: i32, %arg1: i32) -> (i32, i32, i32) {
    %c0_i32 = arith.constant 0 : i32
    %c0_i32_0 = arith.constant 0 : i32
    %c0_i32_1 = arith.constant 0 : i32
    return %arg0, %c0_i32, %c0_i32_0 : i32, i32, i32
  }
}

</mosaic_0001>

<bundles_post_ra>
// kernel: dice_rce_loss.1
= control target key start
LH: loop header
LB: loop body
LE: loop exit
PB: predicated region body
PF: predicated region fallthrough
CT: control target
= control target key end

     0   :  { %s709_s18 = smov 0   ;;  %s711_s19 = smov 0   ;;  %s821_s0 = inlined_call_operand.vmem [shape: f32[2,4,256], index: 0, kind: input, shape index: {}]   ;;  %s822_s1 = inlined_call_operand.vmem [shape: s32[2,1,256], index: 1, kind: input, shape index: {}]   ;;  %s823_s2 = inlined_call_operand.vmem [shape: f32[2,4,1], index: 2, kind: output, shape index: {0}]   ;;  %s824_s3 = inlined_call_operand.vmem [shape: f32[2,4,1], index: 3, kind: output, shape index: {1}]   ;;  %s825_s4 = inlined_call_operand.vmem [shape: f32[2,4,1], index: 4, kind: output, shape index: {2}]   ;;  %s826_s5 = inlined_call_operand.vmem [shape: f32[2,4,1], index: 5, kind: output, shape index: {3}]  }
   0x1   :  { %s713_s20 = smov 0   ;;  %s715_s21 = smov 0  }
   0x2   :  { %s717_s22 = smov 0  }
   0x3 LB: > { %s25_s23 = sadd.s32 1, %s666_s20  ;;  %s28_s24 = sadd.s32 1, %s670_s21  ;;  %s674_s22 = sphi %s717_s22, %s16_s22   ;;  %s670_s21 = sphi %s715_s21, %s834_s21   ;;  %s666_s20 = sphi %s713_s20, %s833_s20   ;;  %s662_s19 = sphi %s711_s19, %s832_s19   ;;  %s658_s18 = sphi %s709_s18, %s831_s18  }
   0x4   : > { %p26_p0 = scmp.ge.s32.totalorder %s25_s23, 2  ;;  %p574_p1 = scmp.ge.s32.totalorder %s674_s22, 1 }
   0x5   : > { %p225_p2 = scmp.lt.s32.totalorder %s674_s22, 5 }
   0x6   : > { %s836_s23 = smov (%p26_p0, %s25_s23), 0  ;;  %s838_s24 = smov (!%p26_p0, %s28_s24), %s670_s21 }
   0x7   : > { %p226_p3 = pnand %p574_p1, %p225_p2  ;;  %p30_p4 = scmp.ge.s32.totalorder %s838_s24, 2 }
   0x8   : > { %p274_p5 = scmp.lt.s32.totalorder (!%p226_p3), %s662_s19, 1  ;;  %p276_p6 = scmp.lt.s32.totalorder (!%p226_p3), %s658_s18, 1 }
   0x9   : > { %s840_s24 = smov (%p30_p4, %s838_s24), 0  ;;  %229 = sbr.rel (%p226_p3) target bundleno = 219 (0xdb), region = 28 }
   0xa   : > { %p582_p7 = scmp.ne.s32.totalorder (!%p226_p3), %s658_s18, 0 }
   0xe   : > { %s842_s19 = smov (!%p274_p5, %s662_s19), 1 }
   0xf   : > { %s277_s25 = scalar_select %p276_p6, %s658_s18, 1 }
  0x10   : > { %s575_s26 = sshll.u32 %s842_s19, 1  ;;  %s578_s27 = sshll.u32 %s842_s19, 2 }
  0x11   : > { %s279_s28 = sadd.s32 %s575_s26, %s277_s25  ;;  %s746_s6 = scalar_lea.vmem %s823_s2, %s578_s27 }
  0x12   : > { %s576_s7 = sshll.u32 %s279_s28, 2  ;;  %s288_s10 = scalar_lea.vmem %s822_s1, %s279_s28 }
  0x13   : > { %s281_s13 = scalar_lea.vmem %s821_s0, %s576_s7  ;;  %s757_s16 = scalar_lea.vmem %s824_s3, %s578_s27 }
  0x14   : > { %s762_s25 = scalar_lea.vmem %s825_s4, %s578_s27  ;;  %s767_s30 = scalar_lea.vmem %s826_s5, %s578_s27 }
  0x15   : > { %308 = sbr.rel (%p582_p7) target bundleno = 31 (0x1f), region = 32 }
  0x1a   : > { %vm309_vm0 = vcmask 3072   ;;  %v676_v0 = vmov 0.0  }
  0x1b   : > { %310 = vst.msk [vmem:[%s746_s6] sm:$0xf] %vm309_vm0, %v676_v0 }
  0x1c   : > { %311 = vst.msk [vmem:[%s757_s16] sm:$0xf] %vm309_vm0, %v676_v0 }
  0x1d   : > { %312 = vst.msk [vmem:[%s762_s25] sm:$0xf] %vm309_vm0, %v676_v0 }
  0x1e   : > { %313 = vst.msk [vmem:[%s767_s30] sm:$0xf] %vm309_vm0, %v676_v0 }
  0x1f PF: > { %v315_v1 = vld [vmem:[%s288_s10] sm:$0x1]  ;;  %vm316_vm1 = vcmask 1043456   ;;  %v352_v2 = vlaneseq  ;;  %v677_v6 = vmov 0   ;;  %v678_v14 = vmov 0.0  }
  0x20   : > { %v629_v3 = vld [vmem:[%s288_s10] ss:$0 sm:$0xff]  ;;  %vm354_vm2 = vcmp.ge.s32.totalorder %v315_v1, 0  ;;  %vm367_vm10 = vcmask 3072  }
  0x21   : > { %v314_v4 = vld [vmem:[%s281_s13] sm:$0xf]  ;;  %v353_v5 = vshrl.u32 %v352_v2, 7  ;;  %v357_v7 = vsel %vm354_vm2, 1, %v677_v6 }
  0x22   : > { %v317_v8 = vsel %vm316_vm1, %v314_v4, -inf  ;;  %v358_v9 = vperm.slane %v357_v7, 0  ;;  %v384_v55 = vld [vmem:[%s746_s6] sm:$0xf] }
  0x23   : > { %v318_v10 = vrot.slane %v317_v8, 4  ;;  %vm356_vm3 = vcmp.eq.s32.totalorder %v353_v5, %v629_v3  ;;  %v361_v58 = vld [vmem:[%s757_s16] sm:$0xf] }
  0x24   : > { %vm775_vm4 = vcmp.eq.s32.totalorder %v358_v9, 1  ;;  %v369_v61 = vld [vmem:[%s762_s25] sm:$0xf] }
  0x25   : > { %v319_v12 = vmax.f32 %v317_v8, %v318_v10  ;;  %vm781_vm5 = vmand %vm356_vm3, %vm775_vm4  ;;  %v376_v52 = vld [vmem:[%s767_s30] sm:$0xf] }
  0x26   : > { %v583_v15 = vsel %vm781_vm5, 1.0, %v678_v14 }
  0x27   : > { %v320_v16 = vrot.slane %v319_v12, 2  ;;  %v379_v17 = vsel %vm316_vm1, %v583_v15, 0.0 }
  0x28   : > { %380 = vadd.xlane.f32.xlu1 %v379_v17 }
  0x29   : > { %v321_v18 = vmax.f32 %v319_v12, %v320_v16 }
  0x2b   : > { %v322_v19 = vrot.slane %v321_v18, 1 }
  0x2d   : > { %v323_v20 = vmax.f32 %v321_v18, %v322_v19 }
  0x2f   : > { %v324_v21 = vsub.f32 %v314_v4, %v323_v20 }
  0x31   : > { %v325_v22 = vmul.f32 1.442695, %v324_v21 }
  0x33   : > { %630 = vpow2.f32 %v325_v22 }
  0x39   : > { %v631_v23 = vpop.eup %630 }
  0x3a   : > { %v327_v24 = vsel %vm316_vm1, %v631_v23, 0.0 }
  0x3b   : > { %v328_v25 = vrot.slane %v327_v24, 4 }
  0x3d   : > { %v329_v26 = vadd.f32 %v328_v25, %v327_v24 }
  0x3f   : > { %v330_v27 = vrot.slane %v329_v26, 2 }
  0x41   : > { %v331_v28 = vadd.f32 %v330_v27, %v329_v26 }
  0x43   : > { %v332_v29 = vrot.slane %v331_v28, 1 }
  0x45   : > { %v333_v30 = vadd.f32 %v332_v29, %v331_v28 }
  0x47   : > { %632 = vrcp.f32 %v333_v30  ;;  %v345_v34 = vand.u32 2147483648, %v333_v30  ;;  %vm339_vm6 = vweird.f32 %v333_v30  ;;  %v343_v37 = vand.u32 2147483647, %v333_v30 }
  0x48   : > { %634 = vlog2.f32 %v333_v30 }
  0x49   : > { %v346_v40 = vor.u32 1.1754944e-38, %v345_v34  ;;  %vm344_vm9 = vcmp.eq.f32.partialorder %v343_v37, 8.507059e+37 }
  0x4d   : > { %v633_v31 = vpop.eup %632 }
  0x4e   : > { %v635_v32 = vpop.eup %634  ;;  %v335_v33 = vmul.f32 %v633_v31, %v333_v30  ;;  %vm340_vm7 = vweird.f32 %v633_v31 }
  0x4f   : > { %v349_v35 = vmul.f32 0.6931472, %v635_v32  ;;  %vm341_vm8 = vmor %vm339_vm6, %vm340_vm7 }
  0x50   : > { %v336_v36 = vsub.f32 1.0, %v335_v33 }
  0x51   : > { %v350_v38 = vadd.f32 %v349_v35, %v323_v20 }
  0x52   : > { %v337_v39 = vmul.f32 %v633_v31, %v336_v36 }
  0x53   : > { %v385_v41 = vsub.f32 %v350_v38, %v314_v4 }
  0x54   : > { %v338_v42 = vadd.f32 %v633_v31, %v337_v39 }
  0x55   : > { %v386_v43 = vsel %vm781_vm5, %v385_v41, 0.0 }
  0x56   : > { %v342_v44 = vsel %vm341_vm8, %v633_v31, %v338_v42  ;;  %v387_v45 = vsel %vm316_vm1, %v386_v43, 0.0 }
  0x57   : > { %v347_v46 = vsel %vm344_vm9, %v346_v40, %v342_v44  ;;  %388 = vadd.xlane.f32.xlu1 %v387_v45 }
  0x58   : > { %v351_v47 = vmul.f32 %v631_v23, %v347_v46 }
  0x5a   : > { %v362_v48 = vsel %vm781_vm5, %v351_v47, 0.0  ;;  %v370_v50 = vsel %vm775_vm4, %v351_v47, 0.0 }
  0x5b   : > { %v363_v49 = vsel %vm316_vm1, %v362_v48, 0.0  ;;  %v371_v51 = vsel %vm316_vm1, %v370_v50, 0.0 }
  0x5c   : > { %364 = vadd.xlane.f32.xlu0 %v363_v49 }
  0x64   : > { %372 = vadd.xlane.f32.xlu0 %v371_v51 }
  0x9b   : > { %v381_v53 = vpop.xlane.xlu1 %380 }
  0x9c   : > { %v382_v54 = vadd.f32 %v381_v53, %v376_v52 }
  0x9e   : > { %383 = vst.msk [vmem:[%s767_s30] sm:$0xf] %vm367_vm10, %v382_v54 }
  0xca   : > { %v389_v56 = vpop.xlane.xlu1 %388 }
  0xcb   : > { %v390_v57 = vadd.f32 %v389_v56, %v384_v55 }
  0xcd   : > { %391 = vst.msk [vmem:[%s746_s6] sm:$0xf] %vm367_vm10, %v390_v57 }
  0xcf   : > { %v365_v59 = vpop.xlane.xlu0 %364 }
  0xd0   : > { %v366_v60 = vadd.f32 %v365_v59, %v361_v58 }
  0xd2   : > { %368 = vst.msk [vmem:[%s757_s16] sm:$0xf] %vm367_vm10, %v366_v60 }
  0xd7   : > { %v373_v62 = vpop.xlane.xlu0 %372 }
  0xd8   : > { %v374_v63 = vadd.f32 %v373_v62, %v369_v61 }
  0xda   : > { %375 = vst.msk [vmem:[%s762_s25] sm:$0xf] %vm367_vm10, %v374_v63 }
  0xdb PF: > { %s16_s22 = sadd.s32 1, %s674_s22   ;;  %s831_s18 = smov %s666_s20 }
  0xdc   : > { %p13_p8 = scmp.ge.s32.totalorder %s16_s22, 6   ;;  %s832_s19 = smov %s670_s21 }
  0xdd   : > { %s833_s20 = smov %s836_s23  ;;  %s834_s21 = smov %s840_s24 }
  0xde   :  { %15 = sbr.rel (!%p13_p8) target bundleno = 3 (0x3), region = 101 }

</bundles_post_ra>
